<compile_context>
chip_gen: v7x
topology: tpu7x:2x2x1
jax: 0.10.0
libtpu: 0.0.40
codegen_flags: <defaults>
</compile_context>

<pallas_src>
import jax
import jax.numpy as jnp
from jax.experimental import pallas as pl
from jax.experimental.pallas import tpu as pltpu


# ----------------------------------------------------------------------------
# Pallas kernel: NB batch images per grid step, fully fused, lane-dense.
# ----------------------------------------------------------------------------
def srblock_kernel(x_ref,      # (NB, H, W*Cin)        lane-dense input rows
                   w1b_ref,    # (3*W*Cin, W*Cf)       conv1 banded, BN1 folded
                   w2b_ref,    # (3*W*Cf,  W*Cf)       conv2 banded, BN2 folded
                   idwb_ref,   # (W*Cin,   W*Cf)       1x1 skip conv, banded
                   c_ref,      # (3, W*Cf)             [b1 | alpha | b2+idb] tiled over W
                   out_ref):   # (NB, H, W*Cf)         lane-dense output
    nb, h, wcin = x_ref.shape
    wcf = out_ref.shape[-1]
    m = nb * h

    x = x_ref[...]
    c = c_ref[...]

    # ---- conv1 (3x3 SAME, BN1 folded): zero-pad H in registers, then one
    # banded lane-dense dot per dy.  dx shifts + boundary zeros live in w1b.
    zx = jnp.zeros((nb, 1, wcin), jnp.float32)
    xp = jnp.concatenate([zx, x, zx], axis=1)                  # (nb, h+2, W*Cin)
    acc1 = None
    for dy in range(3):
        rows = xp[:, dy:dy + h, :].reshape(m, wcin)
        part = jnp.dot(rows, w1b_ref[dy * wcin:(dy + 1) * wcin, :],
                       preferred_element_type=jnp.float32)
        acc1 = part if acc1 is None else acc1 + part
    h1 = acc1 + c[0:1, :]                                      # bias + BN1 shift
    h1 = jnp.where(h1 >= 0.0, h1, c[1:2, :] * h1)              # PReLU

    # ---- skip path: 1x1 idconv(pool(x)); stride=1 -> pool = Identity.
    skip = jnp.dot(x.reshape(m, wcin), idwb_ref[...],
                   preferred_element_type=jnp.float32)         # (m, W*Cf)

    # ---- conv2 (3x3 SAME, BN2 folded): same banded scheme on lane-dense h1.
    zh = jnp.zeros((nb, 1, wcf), jnp.float32)
    h1p = jnp.concatenate([zh, h1.reshape(nb, h, wcf), zh], axis=1)
    acc2 = None
    for dy in range(3):
        rows = h1p[:, dy:dy + h, :].reshape(m, wcf)
        part = jnp.dot(rows, w2b_ref[dy * wcf:(dy + 1) * wcf, :],
                       preferred_element_type=jnp.float32)
        acc2 = part if acc2 is None else acc2 + part

    y = acc2 + c[2:3, :] + skip                                # b2 + BN2 + idb + skip
    out_ref[...] = y.reshape(nb, h, wcf).astype(out_ref.dtype)


# ----------------------------------------------------------------------------
# Wrapper glue: BN/bias folding, banded-weight construction, batching.
# ----------------------------------------------------------------------------
def _pick_nb(n, h, w, cin, cf, budget_bytes=2 << 20):
    """Largest divisor of n whose per-step working set (double-buffered in/out
    blocks, f32, last dims lane-padded to 128) stays under budget_bytes."""
    lanes_in = max(-(-(w * cin) // 128) * 128, 128)
    lanes_out = max(-(-(w * cf) // 128) * 128, 128)
    per_img = 2 * 4 * h * (lanes_in + lanes_out)
    best = 1
    for cand in range(1, n + 1):
        if n % cand == 0 and cand * per_img <= budget_bytes:
            best = cand
    return best


def prepare_kernel_params(params, w):
    """Fold BN (eval mode) + biases and build the banded lane-dense weights."""
    cin, cf = params["w1"].shape[2], params["w1"].shape[3]
    s1, t1 = params["bn1_scale"], params["bn1_shift"]
    s2, t2 = params["bn2_scale"], params["bn2_shift"]

    w1f = (params["w1"] * s1).astype(jnp.float32)             # (3,3,Cin,Cf)
    b1f = (params["b1"] * s1 + t1).astype(jnp.float32)
    w2f = (params["w2"] * s2).astype(jnp.float32)              # (3,3,Cf,Cf)
    b2f = (params["b2"] * s2 + t2 + params["idb"]).astype(jnp.float32)
    alpha = params["prelu_alpha"].astype(jnp.float32)
    idw = params["idw"].astype(jnp.float32)

    # sel[dx, wi_in, wo] = 1 iff wi_in == wo + dx - 1  (SAME, pad=1; boundary
    # taps are simply absent from the band -> implicit zero padding along W).
    sel = jnp.stack([jnp.eye(w, w, k=1 - dx, dtype=jnp.float32)
                     for dx in range(3)])

    w1b = jnp.einsum("xpw,yxio->ypiwo", sel, w1f).reshape(3 * w * cin, w * cf)
    w2b = jnp.einsum("xpw,yxio->ypiwo", sel, w2f).reshape(3 * w * cf, w * cf)
    idwb = jnp.einsum("pw,io->piwo", jnp.eye(w, dtype=jnp.float32),
                      idw).reshape(w * cin, w * cf)
    consts = jnp.stack([jnp.tile(b1f, w), jnp.tile(alpha, w), jnp.tile(b2f, w)])
    return {"w1b": w1b, "w2b": w2b, "idwb": idwb,
            "consts": consts.astype(jnp.float32)}


@jax.jit
def srblock_pallas(x_nchw, kp):
    # NCHW (PyTorch) -> NHWC -> lane-dense rows (N, H, W*Cin); free reshape.
    x = jnp.transpose(x_nchw, (0, 2, 3, 1)).astype(jnp.float32)
    n, h, w, cin = x.shape
    wcf = kp["consts"].shape[-1]
    cf = wcf // w
    x_rows = x.reshape(n, h, w * cin)

    nb = _pick_nb(n, h, w, cin, cf)

    out_rows = pl.pallas_call(
        srblock_kernel,
        out_shape=jax.ShapeDtypeStruct((n, h, wcf), jnp.float32),
        grid_spec=pltpu.PrefetchScalarGridSpec(
            num_scalar_prefetch=0,
            grid=(n // nb,),
            in_specs=[
                pl.BlockSpec((nb, h, w * cin), lambda i: (i, 0, 0)),   # x rows
                pl.BlockSpec((3 * w * cin, wcf), lambda i: (0, 0)),    # w1 banded
                pl.BlockSpec((3 * wcf, wcf), lambda i: (0, 0)),        # w2 banded
                pl.BlockSpec((w * cin, wcf), lambda i: (0, 0)),        # idconv banded
                pl.BlockSpec((3, wcf), lambda i: (0, 0)),              # consts
            ],
            out_specs=pl.BlockSpec((nb, h, wcf), lambda i: (i, 0, 0)),
        ),
        compiler_params=pltpu.CompilerParams(
            dimension_semantics=("parallel",),
            vmem_limit_bytes=32 << 20),
    )(x_rows, kp["w1b"], kp["w2b"], kp["idwb"], kp["consts"])

    # lane-dense (N, H, W*Cf) -> NHWC (same memory order) -> NCHW.
    out_nhwc = out_rows.reshape(n, h, w, cf)
    return jnp.transpose(out_nhwc, (0, 3, 1, 2))


# ----------------------------------------------------------------------------
# Pure-JAX reference (eval-mode BN, unfolded), NHWC convs.
# ----------------------------------------------------------------------------
def srblock_reference(x_nchw, params):
    x = jnp.transpose(x_nchw, (0, 2, 3, 1))
    dn = ("NHWC", "HWIO", "NHWC")
    y = jax.lax.conv_general_dilated(x, params["w1"], (1, 1), "SAME",
                                     dimension_numbers=dn)
    y = y + params["b1"]
    y = y * params["bn1_scale"] + params["bn1_shift"]
    y = jnp.where(y >= 0.0, y, params["prelu_alpha"] * y)
    y = jax.lax.conv_general_dilated(y, params["w2"], (1, 1), "SAME",
                                     dimension_numbers=dn)
    y = y + params["b2"]
    y = y * params["bn2_scale"] + params["bn2_shift"]
    skip = jnp.einsum("nhwc,cf->nhwf", x, params["idw"]) + params["idb"]
    return jnp.transpose(y + skip, (0, 3, 1, 2))


# ----------------------------------------------------------------------------
# Deterministic synthetic parameters (shapes follow nn.Module.__init__).
# ----------------------------------------------------------------------------
def make_params(key, ni, nf, eps=1e-5):
    ks = jax.random.split(key, 12)
    w1 = jax.random.normal(ks[0], (3, 3, ni, nf), jnp.float32) * 0.1
    b1 = jax.random.normal(ks[1], (nf,), jnp.float32) * 0.1
    g1 = 1.0 + 0.1 * jax.random.normal(ks[2], (nf,), jnp.float32)
    be1 = 0.1 * jax.random.normal(ks[3], (nf,), jnp.float32)
    m1 = 0.1 * jax.random.normal(ks[4], (nf,), jnp.float32)
    v1 = jnp.abs(jax.random.normal(ks[5], (nf,), jnp.float32)) + 0.5

    w2 = jax.random.normal(ks[6], (3, 3, nf, nf), jnp.float32) * 0.1
    b2 = jax.random.normal(ks[7], (nf,), jnp.float32) * 0.1
    g2 = 1.0 + 0.1 * jax.random.normal(ks[8], (nf,), jnp.float32)
    be2 = 0.1 * jax.random.normal(ks[9], (nf,), jnp.float32)
    m2 = 0.1 * jax.random.normal(ks[10], (nf,), jnp.float32)
    v2 = jnp.abs(jax.random.normal(ks[11], (nf,), jnp.float32)) + 0.5

    idw = jax.random.normal(jax.random.fold_in(key, 100), (ni, nf),
                            jnp.float32) * 0.1
    idb = jax.random.normal(jax.random.fold_in(key, 101), (nf,),
                            jnp.float32) * 0.1

    s1 = g1 / jnp.sqrt(v1 + eps)
    s2 = g2 / jnp.sqrt(v2 + eps)
    return {
        "w1": w1, "b1": b1,
        "bn1_scale": s1, "bn1_shift": be1 - m1 * s1,
        "prelu_alpha": jnp.full((nf,), 0.25, jnp.float32),  # PyTorch default
        "w2": w2, "b2": b2,
        "bn2_scale": s2, "bn2_shift": be2 - m2 * s2,
        "idw": idw, "idb": idb,
    }


if __name__ == "__main__":
    N, NI, NF, H, W = 2, 4, 8, 16, 16       # SRBlock(ni=4, nf=8, stride=1)
    key = jax.random.PRNGKey(0)
    kx, kparams_key = jax.random.split(key)
    x = jax.random.normal(kx, (N, NI, H, W), jnp.float32)   # NCHW like PyTorch
    params = make_params(kparams_key, NI, NF)

    kparams = prepare_kernel_params(params, W)
    out = jax.block_until_ready(srblock_pallas(x, kparams))

    ref = jax.block_until_ready(srblock_reference(x, params))
    assert out.shape == (N, NF, H, W)
    assert jnp.allclose(out, ref, atol=1e-4, rtol=1e-4), \
        float(jnp.max(jnp.abs(out - ref)))

    print("KERNEL_OK")
</pallas_src>

<mosaic_0001>
module attributes {stable_mosaic.version = 11 : i64} {
  func.func @srblock_kernel(%arg0: i32, %arg1: memref<2x16x64xf32, #tpu.memory_space<vmem>>, %arg2: memref<192x128xf32, #tpu.memory_space<vmem>>, %arg3: memref<384x128xf32, #tpu.memory_space<vmem>>, %arg4: memref<64x128xf32, #tpu.memory_space<vmem>>, %arg5: memref<3x128xf32, #tpu.memory_space<vmem>>, %arg6: memref<2x16x128xf32, #tpu.memory_space<vmem>>) attributes {dimension_semantics = [#tpu.dimension_semantics<parallel>], iteration_bounds = array<i64: 1>, scalar_prefetch = 0 : i64, scratch_operands = 0 : i64, tpu.core_type = #tpu.core_type<tc>, window_params = [{transform_indices = @transform_0, window_bounds = array<i64: 2, 16, 64>}, {pipeline_mode = #tpu.pipeline_mode<synchronous>, transform_indices = @transform_1, window_bounds = array<i64: 192, 128>}, {pipeline_mode = #tpu.pipeline_mode<synchronous>, transform_indices = @transform_2, window_bounds = array<i64: 384, 128>}, {pipeline_mode = #tpu.pipeline_mode<synchronous>, transform_indices = @transform_3, window_bounds = array<i64: 64, 128>}, {pipeline_mode = #tpu.pipeline_mode<synchronous>, transform_indices = @transform_4, window_bounds = array<i64: 3, 128>}, {transform_indices = @transform_5, window_bounds = array<i64: 2, 16, 128>}]} {
    %c0 = arith.constant 0 : index
    %c0_0 = arith.constant 0 : index
    %c0_1 = arith.constant 0 : index
    %0 = vector.load %arg1[%c0, %c0_0, %c0_1] : memref<2x16x64xf32, #tpu.memory_space<vmem>>, vector<2x16x64xf32>
    %c0_2 = arith.constant 0 : index
    %c0_3 = arith.constant 0 : index
    %1 = vector.load %arg5[%c0_2, %c0_3] : memref<3x128xf32, #tpu.memory_space<vmem>>, vector<3x128xf32>
    %cst = arith.constant 0.000000e+00 : f32
    %2 = vector.broadcast %cst : f32 to vector<2x1x64xf32>
    %3 = tpu.concatenate %2, %0, %2 in 1 : vector<2x1x64xf32>, vector<2x16x64xf32>, vector<2x1x64xf32> -> vector<2x18x64xf32>
    %4 = vector.extract_strided_slice %3 {offsets = [0, 0, 0], sizes = [2, 16, 64], strides = [1, 1, 1]} : vector<2x18x64xf32> to vector<2x16x64xf32>
    %5 = vector.shape_cast %4 : vector<2x16x64xf32> to vector<32x64xf32>
    %c0_4 = arith.constant 0 : index
    %c0_5 = arith.constant 0 : index
    %6 = vector.load %arg2[%c0_4, %c0_5] : memref<192x128xf32, #tpu.memory_space<vmem>>, vector<64x128xf32>
    %cst_6 = arith.constant dense<0.000000e+00> : vector<32x128xf32>
    %7 = tpu.matmul %5, %6, %cst_6 {dimension_numbers = #tpu.dot_dimension_numbers<[1], [0], [0], [1], [0, 0, 1, 1], [], []>} : vector<32x64xf32>, vector<64x128xf32>, vector<32x128xf32> -> vector<32x128xf32>
    %8 = vector.extract_strided_slice %3 {offsets = [0, 1, 0], sizes = [2, 16, 64], strides = [1, 1, 1]} : vector<2x18x64xf32> to vector<2x16x64xf32>
    %9 = vector.shape_cast %8 : vector<2x16x64xf32> to vector<32x64xf32>
    %c64 = arith.constant 64 : index
    %c0_7 = arith.constant 0 : index
    %10 = vector.load %arg2[%c64, %c0_7] : memref<192x128xf32, #tpu.memory_space<vmem>>, vector<64x128xf32>
    %cst_8 = arith.constant dense<0.000000e+00> : vector<32x128xf32>
    %11 = tpu.matmul %9, %10, %cst_8 {dimension_numbers = #tpu.dot_dimension_numbers<[1], [0], [0], [1], [0, 0, 1, 1], [], []>} : vector<32x64xf32>, vector<64x128xf32>, vector<32x128xf32> -> vector<32x128xf32>
    %12 = arith.addf %7, %11 : vector<32x128xf32>
    %13 = vector.extract_strided_slice %3 {offsets = [0, 2, 0], sizes = [2, 16, 64], strides = [1, 1, 1]} : vector<2x18x64xf32> to vector<2x16x64xf32>
    %14 = vector.shape_cast %13 : vector<2x16x64xf32> to vector<32x64xf32>
    %c128 = arith.constant 128 : index
    %c0_9 = arith.constant 0 : index
    %15 = vector.load %arg2[%c128, %c0_9] : memref<192x128xf32, #tpu.memory_space<vmem>>, vector<64x128xf32>
    %cst_10 = arith.constant dense<0.000000e+00> : vector<32x128xf32>
    %16 = tpu.matmul %14, %15, %cst_10 {dimension_numbers = #tpu.dot_dimension_numbers<[1], [0], [0], [1], [0, 0, 1, 1], [], []>} : vector<32x64xf32>, vector<64x128xf32>, vector<32x128xf32> -> vector<32x128xf32>
    %17 = arith.addf %12, %16 : vector<32x128xf32>
    %18 = vector.extract_strided_slice %1 {offsets = [0, 0], sizes = [1, 128], strides = [1, 1]} : vector<3x128xf32> to vector<1x128xf32>
    %19 = vector.broadcast %18 : vector<1x128xf32> to vector<32x128xf32>
    %20 = arith.addf %17, %19 : vector<32x128xf32>
    %cst_11 = arith.constant 0.000000e+00 : f32
    %21 = vector.broadcast %cst_11 : f32 to vector<32x128xf32>
    %22 = arith.cmpf oge, %20, %21 : vector<32x128xf32>
    %23 = vector.extract_strided_slice %1 {offsets = [1, 0], sizes = [1, 128], strides = [1, 1]} : vector<3x128xf32> to vector<1x128xf32>
    %24 = vector.broadcast %23 : vector<1x128xf32> to vector<32x128xf32>
    %25 = arith.mulf %24, %20 : vector<32x128xf32>
    %26 = arith.select %22, %20, %25 : vector<32x128xi1>, vector<32x128xf32>
    %27 = vector.shape_cast %0 : vector<2x16x64xf32> to vector<32x64xf32>
    %c0_12 = arith.constant 0 : index
    %c0_13 = arith.constant 0 : index
    %28 = vector.load %arg4[%c0_12, %c0_13] : memref<64x128xf32, #tpu.memory_space<vmem>>, vector<64x128xf32>
    %cst_14 = arith.constant dense<0.000000e+00> : vector<32x128xf32>
    %29 = tpu.matmul %27, %28, %cst_14 {dimension_numbers = #tpu.dot_dimension_numbers<[1], [0], [0], [1], [0, 0, 1, 1], [], []>} : vector<32x64xf32>, vector<64x128xf32>, vector<32x128xf32> -> vector<32x128xf32>
    %cst_15 = arith.constant 0.000000e+00 : f32
    %30 = vector.broadcast %cst_15 : f32 to vector<2x1x128xf32>
    %31 = vector.shape_cast %26 : vector<32x128xf32> to vector<2x16x128xf32>
    %32 = tpu.concatenate %30, %31, %30 in 1 : vector<2x1x128xf32>, vector<2x16x128xf32>, vector<2x1x128xf32> -> vector<2x18x128xf32>
    %33 = vector.extract_strided_slice %32 {offsets = [0, 0, 0], sizes = [2, 16, 128], strides = [1, 1, 1]} : vector<2x18x128xf32> to vector<2x16x128xf32>
    %34 = vector.shape_cast %33 : vector<2x16x128xf32> to vector<32x128xf32>
    %c0_16 = arith.constant 0 : index
    %c0_17 = arith.constant 0 : index
    %35 = vector.load %arg3[%c0_16, %c0_17] : memref<384x128xf32, #tpu.memory_space<vmem>>, vector<128x128xf32>
    %cst_18 = arith.constant dense<0.000000e+00> : vector<32x128xf32>
    %36 = tpu.matmul %34, %35, %cst_18 {dimension_numbers = #tpu.dot_dimension_numbers<[1], [0], [0], [1], [0, 0, 1, 1], [], []>} : vector<32x128xf32>, vector<128x128xf32>, vector<32x128xf32> -> vector<32x128xf32>
    %37 = vector.extract_strided_slice %32 {offsets = [0, 1, 0], sizes = [2, 16, 128], strides = [1, 1, 1]} : vector<2x18x128xf32> to vector<2x16x128xf32>
    %38 = vector.shape_cast %37 : vector<2x16x128xf32> to vector<32x128xf32>
    %c128_19 = arith.constant 128 : index
    %c0_20 = arith.constant 0 : index
    %39 = vector.load %arg3[%c128_19, %c0_20] : memref<384x128xf32, #tpu.memory_space<vmem>>, vector<128x128xf32>
    %cst_21 = arith.constant dense<0.000000e+00> : vector<32x128xf32>
    %40 = tpu.matmul %38, %39, %cst_21 {dimension_numbers = #tpu.dot_dimension_numbers<[1], [0], [0], [1], [0, 0, 1, 1], [], []>} : vector<32x128xf32>, vector<128x128xf32>, vector<32x128xf32> -> vector<32x128xf32>
    %41 = arith.addf %36, %40 : vector<32x128xf32>
    %42 = vector.extract_strided_slice %32 {offsets = [0, 2, 0], sizes = [2, 16, 128], strides = [1, 1, 1]} : vector<2x18x128xf32> to vector<2x16x128xf32>
    %43 = vector.shape_cast %42 : vector<2x16x128xf32> to vector<32x128xf32>
    %c256 = arith.constant 256 : index
    %c0_22 = arith.constant 0 : index
    %44 = vector.load %arg3[%c256, %c0_22] : memref<384x128xf32, #tpu.memory_space<vmem>>, vector<128x128xf32>
    %cst_23 = arith.constant dense<0.000000e+00> : vector<32x128xf32>
    %45 = tpu.matmul %43, %44, %cst_23 {dimension_numbers = #tpu.dot_dimension_numbers<[1], [0], [0], [1], [0, 0, 1, 1], [], []>} : vector<32x128xf32>, vector<128x128xf32>, vector<32x128xf32> -> vector<32x128xf32>
    %46 = arith.addf %41, %45 : vector<32x128xf32>
    %47 = vector.extract_strided_slice %1 {offsets = [2, 0], sizes = [1, 128], strides = [1, 1]} : vector<3x128xf32> to vector<1x128xf32>
    %48 = vector.broadcast %47 : vector<1x128xf32> to vector<32x128xf32>
    %49 = arith.addf %46, %48 : vector<32x128xf32>
    %50 = arith.addf %49, %29 : vector<32x128xf32>
    %51 = vector.shape_cast %50 : vector<32x128xf32> to vector<2x16x128xf32>
    %c0_24 = arith.constant 0 : index
    %c0_25 = arith.constant 0 : index
    %c0_26 = arith.constant 0 : index
    %52 = vector.load %arg6[%c0_24, %c0_25, %c0_26] : memref<2x16x128xf32, #tpu.memory_space<vmem>>, vector<2x16x128xf32>
    tpu.vector_store %arg6[%c0_24, %c0_25, %c0_26], %51 {strides = array<i32>} : memref<2x16x128xf32, #tpu.memory_space<vmem>>, vector<2x16x128xf32>,
    return
  }
  func.func @transform_0(%arg0: i32) -> (i32, i32, i32) {
    %c0_i32 = arith.constant 0 : i32
    %c0_i32_0 = arith.constant 0 : i32
    %c0_i32_1 = arith.constant 0 : i32
    return %arg0, %c0_i32, %c0_i32_0 : i32, i32, i32
  }
  func.func @transform_1(%arg0: i32) -> (i32, i32) {
    %c0_i32 = arith.constant 0 : i32
    %c0_i32_0 = arith.constant 0 : i32
    %c0_i32_1 = arith.constant 0 : i32
    return %c0_i32, %c0_i32_0 : i32, i32
  }
  func.func @transform_2(%arg0: i32) -> (i32, i32) {
    %c0_i32 = arith.constant 0 : i32
    %c0_i32_0 = arith.constant 0 : i32
    %c0_i32_1 = arith.constant 0 : i32
    return %c0_i32, %c0_i32_0 : i32, i32
  }
  func.func @transform_3(%arg0: i32) -> (i32, i32) {
    %c0_i32 = arith.constant 0 : i32
    %c0_i32_0 = arith.constant 0 : i32
    %c0_i32_1 = arith.constant 0 : i32
    return %c0_i32, %c0_i32_0 : i32, i32
  }
  func.func @transform_4(%arg0: i32) -> (i32, i32) {
    %c0_i32 = arith.constant 0 : i32
    %c0_i32_0 = arith.constant 0 : i32
    %c0_i32_1 = arith.constant 0 : i32
    return %c0_i32, %c0_i32_0 : i32, i32
  }
  func.func @transform_5(%arg0: i32) -> (i32, i32, i32) {
    %c0_i32 = arith.constant 0 : i32
    %c0_i32_0 = arith.constant 0 : i32
    %c0_i32_1 = arith.constant 0 : i32
    return %arg0, %c0_i32, %c0_i32_0 : i32, i32, i32
  }
}

</mosaic_0001>

<bundles_post_ra>
// kernel: srblock_pallas.1
= control target key start
LH: loop header
LB: loop body
LE: loop exit
PB: predicated region body
PF: predicated region fallthrough
CT: control target
= control target key end

     0   :  { %10 = vsyncpa [#allocation3], 0  ;;  %s1822_s0 = inlined_call_operand.vmem [shape: f32[2,16,64], index: 0, kind: input, shape index: {}]   ;;  %s1823_s1 = inlined_call_operand.hbm [shape: f32[192,128], index: 1, kind: input, shape index: {}]   ;;  %s1824_s2 = inlined_call_operand.vmem [shape: f32[384,128], index: 2, kind: input, shape index: {}]   ;;  %s1825_s3 = inlined_call_operand.hbm [shape: f32[64,128], index: 3, kind: input, shape index: {}]   ;;  %s1826_s4 = inlined_call_operand.vmem [shape: f32[3,128], index: 4, kind: input, shape index: {}]   ;;  %s1827_s5 = inlined_call_operand.vmem [shape: f32[2,16,128], index: 5, kind: output, shape index: {}]  }
   0x1   :  { %11 = vsyncpa [#allocation5], 0  ;;  %s1478_s18 = smov [#allocation2]   ;;  %s1430_s22 = scalar_lea.hbm %s1823_s1, 3072 }
   0x2   :  { %s19_s19 = sshll.u32 %s1478_s18, 4  ;;  %p1431_p0 = scmp.ne.s32.totalorder %s1823_s1, %s1430_s22  ;;  %s20_s19 = int_to_ptr.vmem [resolvable:$true] %s19_s19 }
   0x3   :  { %p1434_p1 = scmp.lt.u32.totalorder %s1430_s22, %s1823_s1 }
   0x5   :  { %p1436_p2 = pnand %p1434_p1, %p1431_p0 }
   0x7   :  { %1439 = shalt.err (!%p1436_p2)
}
   0x8   :  { %s1440_s27 = scalar_lea.vmem %s20_s19, 3072  ;;  %p1445_p4 = scmp.lt.s32.totalorder %s20_s19, %s20_s19 }
   0x9   :  { %p1441_p3 = scmp.ne.s32.totalorder %s20_s19, %s1440_s27  ;;  %p1446_p5 = scmp.lt.s32.totalorder %s1440_s27, %s1440_s27 }
   0xb   :  { %p1447_p6 = por %p1446_p5, %p1445_p4 }
   0xd   :  { %p1448_p7 = pnand %p1447_p6, %p1441_p3 }
   0xf   :  { %1451 = shalt.err (!%p1448_p7)
}
  0x10   :  { %s1479_s28 = smov 128   ;;  %s1480_s29 = smov 8  }
  0x11   :  { %25 = dma.hbm_to_vmem [thread:$0]  %s1823_s1, 3072, %s20_s19, [#allocation3], %s1479_s28, %s1479_s28, %s1480_s29  }
  0x12   :  { %s1481_s7 = smov [#allocation4]   ;;  %s1452_s11 = scalar_lea.hbm %s1825_s3, 1024 }
  0x13   :  { %s33_s8 = sshll.u32 %s1481_s7, 4  ;;  %p1453_p8 = scmp.ne.s32.totalorder %s1825_s3, %s1452_s11  ;;  %s34_s8 = int_to_ptr.vmem [resolvable:$true] %s33_s8 }
  0x14   :  { %p1456_p9 = scmp.lt.u32.totalorder %s1452_s11, %s1825_s3 }
  0x16   :  { %p1458_p10 = pnand %p1456_p9, %p1453_p8 }
  0x18   :  { %1461 = shalt.err (!%p1458_p10)
}
  0x19   :  { %s1462_s16 = scalar_lea.vmem %s34_s8, 1024  ;;  %p1467_p12 = scmp.lt.s32.totalorder %s34_s8, %s34_s8 }
  0x1a   :  { %p1463_p11 = scmp.ne.s32.totalorder %s34_s8, %s1462_s16  ;;  %p1468_p13 = scmp.lt.s32.totalorder %s1462_s16, %s1462_s16 }
  0x1c   :  { %p1469_p0 = por %p1468_p13, %p1467_p12 }
  0x1e   :  { %p1470_p1 = pnand %p1469_p0, %p1463_p11 }
  0x20   :  { %1473 = shalt.err (!%p1470_p1)
}
  0x21   :  { %39 = dma.hbm_to_vmem [thread:$0]  %s1825_s3, 1024, %s34_s8, [#allocation5], %s1479_s28, %s1479_s28, %s1480_s29  }
  0x22   :  { %1474 = dma.done.wait [#allocation3], 3072  }
  0x23   :  { %1475 = vsyncadd [#allocation3], 4294964224 }
  0x24   :  { %1476 = dma.done.wait [#allocation5], 1024  }
  0x25   :  { %1477 = vsyncadd [#allocation5], 4294966272  ;;  %v95_v0 = vld [vmem:[#allocation2 + $0x40] sm:$0xff]  ;;  %v96_v1 = vld [vmem:[#allocation2 + $0x48] sm:$0xff]  ;;  %vm57_vm0 = vcmask 1040384   ;;  %vm103_vm1 = vcmask 523264  }
  0x26   :  { %v97_v2 = vld [vmem:[#allocation2 + $0x50] sm:$0xff]  ;;  %v1242_v3 = vpack.c.bf16 %v96_v1, %v95_v0  ;;  %v98_v4 = vld [vmem:[#allocation2 + $0x58] sm:$0xff]  ;;  %v99_v6 = vld [vmem:[#allocation2 + $0x60] sm:$0xff]  ;;  %vm84_vm2 = vcmask 1046528   ;;  %vm290_vm3 = vcmask 1045504  }
  0x27   :  { %v1246_v5 = vpack.c.bf16 %v98_v4, %v97_v2  ;;  %v100_v7 = vld [vmem:[#allocation2 + $0x68] sm:$0xff]  ;;  %v48_v8 = vld [vmem:[%s1822_s0] sm:$0xff]  ;;  %v1552_v14 = vld [vmem:[%s1822_s0 + $0x10] sm:$0xff] }
  0x28   :  { %1243 = vmatprep.subr.bf16.mxu0 %v1242_v3  ;;  %v1542_v9 = vld [vmem:[%s1822_s0 + $0x8] sm:$0xff]  ;;  %v58_v10 = vrot.slane %v48_v8, 7  ;;  %1122 = vmatprep.mubr.msk.f32.mxu1 %vm103_vm1, %v48_v8  ;;  %v1250_v12 = vpack.c.bf16 %v100_v7, %v99_v6  ;;  %v1557_v15 = vld [vmem:[%s1822_s0 + $0x18] sm:$0xff]  ;;  %v101_v16 = vld [vmem:[#allocation2 + $0x70] sm:$0xff]  ;;  %v61_v21 = vrot.slane %v1552_v14, 7 }
  0x29   :  { %1245 = vmatpush3.bf16.msra.mxu0 %v1242_v3  ;;  %v59_v11 = vrot.slane %v1542_v9, 7  ;;  %v102_v17 = vld [vmem:[#allocation2 + $0x78] sm:$0xff]  ;;  %v62_v22 = vrot.slane %v1557_v15, 7  ;;  %v430_v26 = vld [vmem:[#allocation4] sm:$0xff]  ;;  %v73_v28 = vld [vmem:[#allocation2 + $0x8] sm:$0xff] }
  0x2a   :  { %1247 = vmatprep.subr.bf16.mxu0 %v1246_v5  ;;  %v1547_v13 = vsel %vm57_vm0, 0.0, %v58_v10  ;;  %v1254_v23 = vpack.c.bf16 %v102_v17, %v101_v16  ;;  %v72_v27 = vld [vmem:[#allocation2] sm:$0xff]  ;;  %v1575_v30 = vsel %vm57_vm0, 0.0, %v61_v21  ;;  %v431_v31 = vld [vmem:[#allocation4 + $0x8] sm:$0xff]  ;;  %v432_v32 = vld [vmem:[#allocation4 + $0x10] sm:$0xff] }
  0x2b   :  { %v1560_v18 = vsel %vm57_vm0, %v58_v10, %v59_v11  ;;  %v85_v19 = vrot.slane %v1547_v13, 1  ;;  %v1568_v25 = vsel %vm57_vm0, %v59_v11, 0.0  ;;  %v1572_v29 = vsel %vm57_vm0, %v61_v21, %v62_v22  ;;  %v433_v33 = vld [vmem:[#allocation4 + $0x18] sm:$0xff]  ;;  %v74_v37 = vld [vmem:[#allocation2 + $0x10] sm:$0xff]  ;;  %v434_v43 = vld [vmem:[#allocation4 + $0x20] sm:$0xff] }
  0x2c   :  { %v86_v20 = vrot.slane %v1560_v18, 1  ;;  %v88_v34 = vrot.slane %v1568_v25, 1  ;;  %v1290_v35 = vpack.c.bf16 %v431_v31, %v430_v26  ;;  %v1258_v36 = vpack.c.bf16 %v73_v28, %v72_v27  ;;  %v75_v41 = vld [vmem:[#allocation2 + $0x18] sm:$0xff]  ;;  %v435_v44 = vld [vmem:[#allocation4 + $0x28] sm:$0xff]  ;;  %v76_v48 = vld [vmem:[#allocation2 + $0x20] sm:$0xff] }
  0x2d   :  { %1249 = vmatpush3.bf16.msra.mxu0 %v1246_v5  ;;  %v90_v38 = vrot.slane %v1575_v30, 1  ;;  %v91_v39 = vrot.slane %v1572_v29, 1  ;;  %v1581_v40 = vsel %vm57_vm0, %v62_v22, 0.0  ;;  %v1294_v42 = vpack.c.bf16 %v433_v33, %v432_v32  ;;  %v77_v51 = vld [vmem:[#allocation2 + $0x28] sm:$0xff]  ;;  %v436_v52 = vld [vmem:[#allocation4 + $0x30] sm:$0xff]  ;;  %v437_v53 = vld [vmem:[#allocation4 + $0x38] sm:$0xff] }
  0x2e   :  { %1251 = vmatprep.subr.bf16.mxu0 %v1250_v12  ;;  %v87_v24 = vsel %vm84_vm2, %v85_v19, %v86_v20  ;;  %1291 = vmatprep.subr.bf16.mxu1 %v1290_v35  ;;  %v89_v45 = vsel %vm84_vm2, %v86_v20, %v88_v34  ;;  %v93_v46 = vrot.slane %v1581_v40, 1  ;;  %v1262_v47 = vpack.c.bf16 %v75_v41, %v74_v37  ;;  %v551_v57 = vld [vmem:[%s1824_s2] sm:$0xff]  ;;  %v552_v58 = vld [vmem:[%s1824_s2 + $0x8] sm:$0xff]  ;;  %v78_v59 = vld [vmem:[#allocation2 + $0x30] sm:$0xff] }
  0x2f   :  { %1056 = vmatprep.mubr.msk.f32.mxu0 %vm103_vm1, %v87_v24  ;;  %1293 = vmatpush3.bf16.msra.mxu1 %v1290_v35  ;;  %v92_v49 = vsel %vm84_vm2, %v90_v38, %v91_v39  ;;  %v1298_v50 = vpack.c.bf16 %v435_v44, %v434_v43  ;;  %v1266_v55 = vpack.c.bf16 %v77_v51, %v76_v48  ;;  %v79_v60 = vld [vmem:[#allocation2 + $0x38] sm:$0xff]  ;;  %v553_v63 = vld [vmem:[%s1824_s2 + $0x10] sm:$0xff]  ;;  %v301_v1 = vld [vmem:[#allocation2 + $0x80] sm:$0xff]  ;;  %v294_v33 = vrot.slane %v1568_v25, 2 }
  0x30   :  { %1295 = vmatprep.subr.bf16.mxu1 %v1294_v42  ;;  %v94_v54 = vsel %vm84_vm2, %v91_v39, %v93_v46  ;;  %v1302_v56 = vpack.c.bf16 %v437_v53, %v436_v52  ;;  %v1338_v61 = vpack.c.bf16 %v552_v58, %v551_v57  ;;  %v1270_v62 = vpack.c.bf16 %v79_v60, %v78_v59  ;;  %v554_v0 = vld [vmem:[%s1824_s2 + $0x18] sm:$0xff]  ;;  %v302_v2 = vld [vmem:[#allocation2 + $0x88] sm:$0xff]  ;;  %v303_v5 = vld [vmem:[#allocation2 + $0x90] sm:$0xff] }
  0x31   :  { %1253 = vmatpush3.bf16.msra.mxu0 %v1250_v12  ;;  %v1342_v3 = vpack.c.bf16 %v554_v0, %v553_v63  ;;  %v1274_v4 = vpack.c.bf16 %v302_v2, %v301_v1  ;;  %v304_v6 = vld [vmem:[#allocation2 + $0x98] sm:$0xff]  ;;  %v555_v7 = vld [vmem:[%s1824_s2 + $0x20] sm:$0xff]  ;;  %v556_v8 = vld [vmem:[%s1824_s2 + $0x28] sm:$0xff]  ;;  %v291_v12 = vrot.slane %v1547_v13, 2  ;;  %v296_v35 = vrot.slane %v1575_v30, 2 }
  0x32   :  { %1255 = vmatprep.subr.bf16.mxu0 %v1254_v23  ;;  %v1278_v10 = vpack.c.bf16 %v304_v6, %v303_v5  ;;  %v305_v11 = vld [vmem:[#allocation2 + $0xa0] sm:$0xff]  ;;  %v1346_v16 = vpack.c.bf16 %v556_v8, %v555_v7  ;;  %v306_v17 = vld [vmem:[#allocation2 + $0xa8] sm:$0xff]  ;;  %v557_v19 = vld [vmem:[%s1824_s2 + $0x30] sm:$0xff]  ;;  %v299_v41 = vrot.slane %v1581_v40, 2 }
  0x33   :  { %1297 = vmatpush3.bf16.msra.mxu1 %v1294_v42  ;;  %v559_v22 = vld [vmem:[%s1824_s2 + $0x40] sm:$0xff]  ;;  %v561_v27 = vld [vmem:[%s1824_s2 + $0x50] sm:$0xff]  ;;  %v562_v28 = vld [vmem:[%s1824_s2 + $0x58] sm:$0xff] }
  0x34   :  { %1299 = vmatprep.subr.bf16.mxu1 %v1298_v50  ;;  %v585_v31 = vld [vmem:[%s1824_s2 + $0x80] sm:$0xff]  ;;  %v586_v32 = vld [vmem:[%s1824_s2 + $0x88] sm:$0xff]  ;;  %v1358_v34 = vpack.c.bf16 %v562_v28, %v561_v27  ;;  %v587_v38 = vld [vmem:[%s1824_s2 + $0x90] sm:$0xff] }
  0x35   :  { %1257 = vmatpush3.bf16.msra.mxu0 %v1254_v23  ;;  %v308_v23 = vld [vmem:[#allocation2 + $0xb8] sm:$0xff]  ;;  %v1306_v37 = vpack.c.bf16 %v586_v32, %v585_v31  ;;  %v589_v42 = vld [vmem:[%s1824_s2 + $0xa0] sm:$0xff]  ;;  %v590_v43 = vld [vmem:[%s1824_s2 + $0xa8] sm:$0xff] }
  0x36   :  { %1259 = vmatprep.subr.bf16.mxu0 %v1258_v36  ;;  %v588_v39 = vld [vmem:[%s1824_s2 + $0x98] sm:$0xff]  ;;  %v1314_v44 = vpack.c.bf16 %v590_v43, %v589_v42  ;;  %v593_v48 = vld [vmem:[%s1824_s2 + $0xc0] sm:$0xff]  ;;  %v564_v52 = vld [vmem:[%s1824_s2 + $0x68] sm:$0xff] }
  0x37   :  { %1301 = vmatpush3.bf16.msra.mxu1 %v1298_v50  ;;  %v592_v46 = vld [vmem:[%s1824_s2 + $0xb8] sm:$0xff]  ;;  %v563_v51 = vld [vmem:[%s1824_s2 + $0x60] sm:$0xff]  ;;  %v565_v57 = vld [vmem:[%s1824_s2 + $0x70] sm:$0xff] }
  0x38   :  { %1057 = vmatmul.mubr.msk.f32.vlgmr.msra.gmra.mrb[0].mxu0 %vm103_vm1, %v89_v45  ;;  %1303 = vmatprep.subr.bf16.mxu1 %v1302_v56  ;;  %v591_v45 = vld [vmem:[%s1824_s2 + $0xb0] sm:$0xff]  ;;  %v1362_v53 = vpack.c.bf16 %v564_v52, %v563_v51  ;;  %v566_v58 = vld [vmem:[%s1824_s2 + $0x78] sm:$0xff]  ;;  %v597_v60 = vld [vmem:[%s1824_s2 + $0xe0] sm:$0xff] }
  0x39   :  { %1261 = vmatpush3.bf16.msra.mxu0 %v1258_v36  ;;  %1059 = vmatprep.mubr.msk.f32.mxu0 %vm103_vm1, %v92_v49  ;;  %v297_v36 = vrot.slane %v1572_v29, 2  ;;  %v594_v49 = vld [vmem:[%s1824_s2 + $0xc8] sm:$0xff]  ;;  %v1366_v59 = vpack.c.bf16 %v566_v58, %v565_v57  ;;  %v785_v63 = vld [vmem:[%s1824_s2 + $0x100] sm:$0xff]  ;;  %v599_v2 = vld [vmem:[%s1824_s2 + $0xf0] sm:$0xff] }
  0x3a   :  { %1263 = vmatprep.subr.bf16.mxu0 %v1262_v47  ;;  %v1322_v50 = vpack.c.bf16 %v594_v49, %v593_v48  ;;  %v786_v0 = vld [vmem:[%s1824_s2 + $0x108] sm:$0xff]  ;;  %v787_v27 = vld [vmem:[%s1824_s2 + $0x110] sm:$0xff]  ;;  %v788_v28 = vld [vmem:[%s1824_s2 + $0x118] sm:$0xff] }
  0x3b   :  { %1305 = vmatpush3.bf16.msra.mxu1 %v1302_v56  ;;  %v300_v40 = vsel %vm290_vm3, %v297_v36, %v299_v41  ;;  %v1370_v1 = vpack.c.bf16 %v786_v0, %v785_v63  ;;  %vm1746_vm6 = vmneg %vm57_vm0  ;;  %v789_v42 = vld [vmem:[%s1824_s2 + $0x120] sm:$0xff]  ;;  %v790_v43 = vld [vmem:[%s1824_s2 + $0x128] sm:$0xff] }
  0x3c   :  { %1060 = vmatmul.mubr.msk.f32.gmra.mrb[2].mxu0 %vm103_vm1, %v94_v54  ;;  %1339 = vmatprep.subr.bf16.mxu1 %v1338_v61  ;;  %v595_v54 = vld [vmem:[%s1824_s2 + $0xd0] sm:$0xff]  ;;  %v1378_v52 = vpack.c.bf16 %v790_v43, %v789_v42 }
  0x3d   :  { %1265 = vmatpush3.bf16.msra.mxu0 %v1262_v47  ;;  %1078 = vmatprep.mubr.msk.f32.mxu0 %vm103_vm1, %v1547_v13  ;;  %v1282_v13 = vpack.c.bf16 %v306_v17, %v305_v11  ;;  %v1318_v47 = vpack.c.bf16 %v592_v46, %v591_v45  ;;  %v791_v58 = vld [vmem:[%s1824_s2 + $0x130] sm:$0xff] }
  0x3e   :  { %1267 = vmatprep.subr.bf16.mxu0 %v1266_v55  ;;  %1123 = vmatmul.mubr.msk.f32.vlgmr.msra.gmra.mrb[0].mxu1 %vm103_vm1, %v1542_v9  ;;  %v292_v9 = vrot.slane %v1560_v18, 2 }
  0x3f   :  { %1341 = vmatpush3.bf16.msra.mxu1 %v1338_v61  ;;  %1125 = vmatprep.mubr.msk.f32.mxu1 %vm103_vm1, %v1552_v14  ;;  %v558_v14 = vld [vmem:[%s1824_s2 + $0x38] sm:$0xff]  ;;  %v598_v61 = vld [vmem:[%s1824_s2 + $0xe8] sm:$0xff] }
  0x40   :  { %1343 = vmatprep.subr.bf16.mxu1 %v1342_v3  ;;  %v293_v20 = vsel %vm290_vm3, %v291_v12, %v292_v9  ;;  %v1350_v21 = vpack.c.bf16 %v558_v14, %v557_v19  ;;  %v295_v25 = vsel %vm290_vm3, %v292_v9, %v294_v33  ;;  %v1734_v9 = vld [vmem:[%s1826_s4] sm:$0x7] }
  0x41   :  { %1269 = vmatpush3.bf16.msra.mxu0 %v1266_v55  ;;  %v596_v55 = vld [vmem:[%s1824_s2 + $0xd8] sm:$0xff] }
  0x42   :  { %1271 = vmatprep.subr.bf16.mxu0 %v1270_v62  ;;  %1126 = vmatmul.mubr.msk.f32.gmra.mrb[2].mxu1 %vm103_vm1, %v1557_v15  ;;  %v560_v15 = vld [vmem:[%s1824_s2 + $0x48] sm:$0xff]  ;;  %v1326_v56 = vpack.c.bf16 %v596_v55, %v595_v54 }
  0x43   :  { %1345 = vmatpush3.bf16.msra.mxu1 %v1342_v3  ;;  %v1354_v24 = vpack.c.bf16 %v560_v15, %v559_v22  ;;  %v600_v3 = vld [vmem:[%s1824_s2 + $0xf8] sm:$0xff] }
  0x44   :  { %1347 = vmatprep.subr.bf16.mxu1 %v1346_v16 }
  0x45   :  { %1273 = vmatpush3.bf16.msra.mxu0 %v1270_v62  ;;  %v1330_v62 = vpack.c.bf16 %v598_v61, %v597_v60 }
  0x46   :  { %1275 = vmatprep.subr.bf16.mxu0 %v1274_v4 }
  0x47   :  { %1349 = vmatpush3.bf16.msra.mxu1 %v1346_v16 }
  0x48   :  { %1079 = vmatmul.mubr.msk.f32.vlgmr.msra.gmra.mrb[0].mxu0 %vm103_vm1, %v1560_v18  ;;  %v307_v18 = vld [vmem:[#allocation2 + $0xb0] sm:$0xff]  ;;  %1351 = vmatprep.subr.bf16.mxu1 %v1350_v21 }
  0x49   :  { %1277 = vmatpush3.bf16.msra.mxu0 %v1274_v4  ;;  %1081 = vmatprep.mubr.msk.f32.mxu0 %vm103_vm1, %v1575_v30  ;;  %v1286_v26 = vpack.c.bf16 %v308_v23, %v307_v18  ;;  %v298_v30 = vsel %vm290_vm3, %v296_v35, %v297_v36  ;;  %v1334_v4 = vpack.c.bf16 %v600_v3, %v599_v2 }
  0x4a   :  { %1279 = vmatprep.subr.bf16.mxu0 %v1278_v10 }
  0x4b   :  { %1353 = vmatpush3.bf16.msra.mxu1 %v1350_v21 }
  0x4c   :  { %1082 = vmatmul.mubr.msk.f32.gmra.mrb[2].mxu0 %vm103_vm1, %v1572_v29  ;;  %1355 = vmatprep.subr.bf16.mxu1 %v1354_v24  ;;  %v1310_v29 = vpack.c.bf16 %v588_v39, %v587_v38  ;;  %v1374_v39 = vpack.c.bf16 %v788_v28, %v787_v27 }
  0x4d   :  { %1281 = vmatpush3.bf16.msra.mxu0 %v1278_v10  ;;  %1100 = vmatprep.mubr.msk.f32.mxu0 %vm103_vm1, %v293_v20  ;;  %v406_v10 = vlaneseq }
  0x4e   :  { %1283 = vmatprep.subr.bf16.mxu0 %v1282_v13 }
  0x4f   :  { %1357 = vmatpush3.bf16.msra.mxu1 %v1354_v24  ;;  %v1728_v11 = vshrl.u32 %v406_v10, 7 }
  0x50   :  { %1359 = vmatprep.subr.bf16.mxu1 %v1358_v34 }
  0x51   :  { %1285 = vmatpush3.bf16.msra.mxu0 %v1282_v13  ;;  %v408_v12 = vsub.s32 0, %v1728_v11  ;;  %v420_v16 = vsub.s32 1, %v1728_v11 }
  0x52   :  { %1287 = vmatprep.subr.bf16.mxu0 %v1286_v26 }
  0x53   :  { %1361 = vmatpush3.bf16.msra.mxu1 %v1358_v34  ;;  %v409_v17 = vrot.slane %v1734_v9, %v408_v12  ;;  %v421_v19 = vrot.slane %v1734_v9, %v420_v16  ;;  %v793_v12 = vld [vmem:[%s1824_s2 + $0x140] sm:$0xff]  ;;  %v794_v16 = vld [vmem:[%s1824_s2 + $0x148] sm:$0xff] }
  0x54   :  { %1363 = vmatprep.subr.bf16.mxu1 %v1362_v53 }
  0x55   :  { %1289 = vmatpush3.bf16.msra.mxu0 %v1286_v26 }
  0x56   :  { %1307 = vmatprep.subr.bf16.mxu0 %v1306_v37 }
  0x57   :  { %1365 = vmatpush3.bf16.msra.mxu1 %v1362_v53 }
  0x58   :  { %1101 = vmatmul.mubr.msk.f32.vlgmr.msra.gmra.mrb[0].mxu0 %vm103_vm1, %v295_v25  ;;  %1367 = vmatprep.subr.bf16.mxu1 %v1366_v59 }
  0x59   :  { %1103 = vmatprep.mubr.msk.f32.mxu0 %vm103_vm1, %v298_v30  ;;  %1309 = vmatpush3.bf16.msra.mxu0 %v1306_v37 }
  0x5a   :  { %1311 = vmatprep.subr.bf16.mxu0 %v1310_v29 }
  0x5b   :  { %1369 = vmatpush3.bf16.msra.mxu1 %v1366_v59  ;;  %v792_v59 = vld [vmem:[%s1824_s2 + $0x138] sm:$0xff] }
  0x5c   :  { %1104 = vmatmul.mubr.msk.f32.gmra.mrb[2].mxu0 %vm103_vm1, %v300_v40  ;;  %1371 = vmatprep.subr.bf16.mxu1 %v1370_v1  ;;  %v1382_v10 = vpack.c.bf16 %v792_v59, %v791_v58 }
  0x5d   :  { %1313 = vmatpush3.bf16.msra.mxu0 %v1310_v29 }
  0x5e   :  { %1315 = vmatprep.subr.bf16.mxu0 %v1314_v44 }
  0x61   :  { %1317 = vmatpush3.bf16.msra.mxu0 %v1314_v44 }
  0x62   :  { %1319 = vmatprep.subr.bf16.mxu0 %v1318_v47 }
  0x65   :  { %1321 = vmatpush3.bf16.msra.mxu0 %v1318_v47 }
  0x66   :  { %1323 = vmatprep.subr.bf16.mxu0 %v1322_v50 }
  0x69   :  { %1325 = vmatpush3.bf16.msra.mxu0 %v1322_v50 }
  0x6a   :  { %1327 = vmatprep.subr.bf16.mxu0 %v1326_v56 }
  0x6d   :  { %1329 = vmatpush3.bf16.msra.mxu0 %v1326_v56 }
  0x6e   :  { %1331 = vmatprep.subr.bf16.mxu0 %v1330_v62 }
  0x71   :  { %1333 = vmatpush3.bf16.msra.mxu0 %v1330_v62 }
  0x72   :  { %1335 = vmatprep.subr.bf16.mxu0 %v1334_v4 }
  0x75   :  { %1337 = vmatpush3.bf16.msra.mxu0 %v1334_v4 }
 0x111   :  { %v1720_v5 = vpop.f32.mrb[0].mxu1 }
 0x112   :  { %v1722_v6 = vpop.f32.mrb[1].mxu1 }
 0x115   :  { %v1724_v7 = vpop.f32.mrb[2].mxu1 }
 0x116   :  { %v1726_v8 = vpop.f32.mrb[3].mxu1 }
 0x12b   :  { %v1102_v14 = vpop.f32.mrb[0].mxu0 }
 0x12c   :  { %v411_v13 = vadd.f32 %v1102_v14, %v409_v17  ;;  %v383_v20 = vpop.f32.mrb[1].mxu0  ;;  %v1386_v14 = vpack.c.bf16 %v794_v16, %v793_v12 }
 0x12d   :  { %v410_v21 = vadd.f32 %v409_v17, %v383_v20  ;;  %v796_v20 = vld [vmem:[%s1824_s2 + $0x158] sm:$0xff] }
 0x12e   :  { %vm415_vm4 = vcmp.ge.f32.partialorder %v411_v13, 0.0  ;;  %v423_v22 = vmul.f32 %v421_v19, %v411_v13 }
 0x12f   :  { %vm414_vm5 = vcmp.ge.f32.partialorder %v410_v21, 0.0  ;;  %v422_v15 = vmul.f32 %v421_v19, %v410_v21  ;;  %v1105_v18 = vpop.f32.mrb[2].mxu0 }
 0x130   :  { %v427_v23 = vsel %vm415_vm4, %v411_v13, %v423_v22  ;;  %v413_v24 = vadd.f32 %v1105_v18, %v409_v17  ;;  %v393_v26 = vpop.f32.mrb[3].mxu0  ;;  %v795_v13 = vld [vmem:[%s1824_s2 + $0x150] sm:$0xff]  ;;  %v797_v22 = vld [vmem:[%s1824_s2 + $0x160] sm:$0xff] }
 0x131   :  { %v536_v31 = vrot.slane %v427_v23, 7  ;;  %v426_v32 = vsel %vm414_vm5, %v410_v21, %v422_v15  ;;  %v412_v33 = vadd.f32 %v409_v17, %v393_v26  ;;  %v1390_v21 = vpack.c.bf16 %v796_v20, %v795_v13  ;;  %v798_v15 = vld [vmem:[%s1824_s2 + $0x168] sm:$0xff]  ;;  %v799_v23 = vld [vmem:[%s1824_s2 + $0x170] sm:$0xff] }
 0x132   :  { %v535_v35 = vrot.slane %v426_v32, 7  ;;  %vm417_vm7 = vcmp.ge.f32.partialorder %v413_v24, 0.0  ;;  %v425_v36 = vmul.f32 %v421_v19, %v413_v24  ;;  %v1394_v18 = vpack.c.bf16 %v798_v15, %v797_v22 }
 0x133   :  { %v549_v37 = vsel %vm57_vm0, %v536_v31, 0.0  ;;  %vm416_vm8 = vcmp.ge.f32.partialorder %v412_v33, 0.0  ;;  %v424_v38 = vmul.f32 %v421_v19, %v412_v33 }
 0x134   :  { %v574_v25 = vrot.slane %v549_v37, 1  ;;  %v774_v41 = vrot.slane %v549_v37, 2  ;;  %v429_v30 = vsel %vm417_vm7, %v413_v24, %v425_v36  ;;  %1198 = vmatprep.mubr.msk.f32.mxu1 %vm1746_vm6, %v535_v35  ;;  %v537_v29 = vsel %vm57_vm0, %v535_v35, %v536_v31  ;;  %v800_v24 = vld [vmem:[%s1824_s2 + $0x178] sm:$0xff] }
 0x135   :  { %v539_v40 = vrot.slane %v429_v30, 7  ;;  %v428_v44 = vsel %vm416_vm8, %v412_v33, %v424_v38  ;;  %1199 = vmatmul.mubr.f32.vlgmr.msra.gmra.mrb[4].mxu1 %v537_v29  ;;  %v547_v45 = vsel %vm57_vm0, 0.0, %v535_v35  ;;  %v572_v46 = vrot.slane %v537_v29, 1 }
 0x136   :  { %v538_v47 = vrot.slane %v428_v44, 7  ;;  %1373 = vmatpush3.bf16.msra.mxu1 %v1370_v1  ;;  %v571_v48 = vrot.slane %v547_v45, 1  ;;  %v771_v49 = vrot.slane %v547_v45, 2  ;;  %v772_v50 = vrot.slane %v537_v29, 2 }
 0x137   :  { %1375 = vmatprep.subr.bf16.mxu1 %v1374_v39  ;;  %v575_v51 = vsel %vm84_vm2, %v572_v46, %v574_v25  ;;  %v550_v53 = vsel %vm57_vm0, %v539_v40, 0.0  ;;  %v1398_v26 = vpack.c.bf16 %v800_v24, %v799_v23  ;;  %v892_v37 = vsub.s32 2, %v1728_v11 }
 0x138   :  { %v573_v54 = vsel %vm84_vm2, %v571_v48, %v572_v46  ;;  %1201 = vmatprep.mubr.msk.f32.mxu1 %vm1746_vm6, %v538_v47  ;;  %v540_v55 = vsel %vm57_vm0, %v538_v47, %v539_v40  ;;  %v773_v56 = vsel %vm290_vm3, %v771_v49, %v772_v50  ;;  %v548_v57 = vsel %vm57_vm0, 0.0, %v538_v47 }
 0x139   :  { %1160 = vmatprep.mubr.f32.mxu0 %v573_v54  ;;  %v577_v60 = vrot.slane %v540_v55, 1  ;;  %1202 = vmatmul.mubr.f32.gmra.mrb[6].mxu1 %v540_v55  ;;  %v777_v61 = vrot.slane %v540_v55, 2  ;;  %v576_v62 = vrot.slane %v548_v57, 1  ;;  %v579_v63 = vrot.slane %v550_v53, 1 }
 0x13a   :  { %1161 = vmatmul.mubr.f32.vlgmr.msra.gmra.mrb[4].mxu0 %v575_v51  ;;  %1377 = vmatpush3.bf16.msra.mxu1 %v1374_v39  ;;  %v775_v0 = vsel %vm290_vm3, %v772_v50, %v774_v41  ;;  %v776_v1 = vrot.slane %v548_v57, 2  ;;  %v779_v2 = vrot.slane %v550_v53, 2  ;;  %v893_v38 = vrot.slane %v1734_v9, %v892_v37 }
 0x13b   :  { %1236 = vmatprep.mubr.f32.mxu1 %v773_v56  ;;  %v578_v3 = vsel %vm84_vm2, %v576_v62, %v577_v60  ;;  %1379 = vmatprep.subr.bf16.mxu1 %v1378_v52  ;;  %v580_v4 = vsel %vm84_vm2, %v577_v60, %v579_v63 }
 0x13c   :  { %1163 = vmatprep.mubr.f32.mxu0 %v578_v3  ;;  %v778_v17 = vsel %vm290_vm3, %v776_v1, %v777_v61  ;;  %v780_v19 = vsel %vm290_vm3, %v777_v61, %v779_v2 }
 0x13e   :  { %1164 = vmatmul.mubr.f32.gmra.mrb[6].mxu0 %v580_v4  ;;  %1381 = vmatpush3.bf16.msra.mxu1 %v1378_v52 }
 0x13f   :  { %1383 = vmatprep.subr.bf16.mxu1 %v1382_v10 }
 0x142   :  { %1385 = vmatpush3.bf16.msra.mxu1 %v1382_v10 }
 0x143   :  { %1387 = vmatprep.subr.bf16.mxu1 %v1386_v14 }
 0x146   :  { %1389 = vmatpush3.bf16.msra.mxu1 %v1386_v14 }
 0x147   :  { %1391 = vmatprep.subr.bf16.mxu1 %v1390_v21 }
 0x14a   :  { %1393 = vmatpush3.bf16.msra.mxu1 %v1390_v21 }
 0x14b   :  { %1395 = vmatprep.subr.bf16.mxu1 %v1394_v18 }
 0x14e   :  { %1397 = vmatpush3.bf16.msra.mxu1 %v1394_v18 }
 0x14f   :  { %1399 = vmatprep.subr.bf16.mxu1 %v1398_v26 }
 0x152   :  { %1401 = vmatpush3.bf16.msra.mxu1 %v1398_v26 }
 0x155   :  { %1237 = vmatmul.mubr.f32.vlgmr.msra.gmra.mrb[4].mxu1 %v775_v0 }
 0x156   :  { %1239 = vmatprep.mubr.f32.mxu1 %v778_v17 }
 0x159   :  { %1240 = vmatmul.mubr.f32.gmra.mrb[6].mxu1 %v780_v19 }
 0x20d   :  { %v1162_v27 = vpop.f32.mrb[4].mxu0 }
 0x20e   :  { %v1402_v28 = vadd.f32 %v1162_v27, %v1720_v5  ;;  %v667_v31 = vpop.f32.mrb[5].mxu0 }
 0x20f   :  { %v1405_v32 = vadd.f32 %v667_v31, %v1722_v6 }
 0x211   :  { %v1165_v33 = vpop.f32.mrb[6].mxu0 }
 0x212   :  { %v1408_v34 = vadd.f32 %v1165_v33, %v1724_v7  ;;  %v677_v35 = vpop.f32.mrb[7].mxu0 }
 0x213   :  { %v1411_v36 = vadd.f32 %v677_v35, %v1726_v8 }
 0x228   :  { %v1238_v39 = vpop.f32.mrb[4].mxu1 }
 0x229   :  { %v1403_v25 = vadd.f32 %v1402_v28, %v1238_v39  ;;  %v867_v41 = vpop.f32.mrb[5].mxu1 }
 0x22a   :  { %v1406_v30 = vadd.f32 %v1405_v32, %v867_v41 }
 0x22b   :  { %v1404_v29 = vadd.f32 %v1403_v25, %v893_v38 }
 0x22c   :  { %v1407_v42 = vadd.f32 %v1406_v30, %v893_v38  ;;  %v1241_v5 = vpop.f32.mrb[6].mxu1 }
 0x22d   :  { %903 = vst [vmem:[%s1827_s5 + $0x8] sm:$0xff] %v1404_v29  ;;  %v1409_v6 = vadd.f32 %v1408_v34, %v1241_v5  ;;  %v877_v7 = vpop.f32.mrb[7].mxu1 }
 0x22e   :  { %902 = vst [vmem:[%s1827_s5] sm:$0xff] %v1407_v42  ;;  %v1412_v8 = vadd.f32 %v1411_v36, %v877_v7 }
 0x22f   :  { %v1410_v11 = vadd.f32 %v1409_v6, %v893_v38 }
 0x230   :  { %v1413_v9 = vadd.f32 %v1412_v8, %v893_v38 }
 0x231   :  { %905 = vst [vmem:[%s1827_s5 + $0x18] sm:$0xff] %v1410_v11 }
 0x232   :  { %904 = vst [vmem:[%s1827_s5 + $0x10] sm:$0xff] %v1413_v9 }
 0x233   :  { %910 = vsyncpa [#allocation3], 1 }
 0x234   :  { %911 = vsyncpa [#allocation5], 1 }

</bundles_post_ra>
